<compile_context>
chip_gen: v6e
topology: v6e:2x2x1
jax: 0.10.0
libtpu: 0.0.40
codegen_flags: <defaults>
</compile_context>

<pallas_src>
import jax
import jax.numpy as jnp
from jax.experimental import pallas as pl
from jax.experimental.pallas import tpu as pltpu


def mlp_kernel(x_ref, w1_ref, b1_ref, w2_ref, b2_ref, o_ref):
    # x_ref:  (TB, D_in)
    # w1_ref: (D_in, D_hid),  b1_ref: (1, D_hid)
    # w2_ref: (D_hid, D_out), b2_ref: (1, D_out)
    # o_ref:  (TB, D_out)
    x = x_ref[...]
    h = jnp.dot(x, w1_ref[...], preferred_element_type=jnp.float32) + b1_ref[...]
    h = jax.nn.sigmoid(h)                     # f32 elementwise (v5e-safe EUP path)
    y = (jnp.dot(h.astype(w2_ref.dtype), w2_ref[...],
                 preferred_element_type=jnp.float32)
         + b2_ref[...])
    o_ref[...] = y.astype(o_ref.dtype)


def prepare_params(w1, b1, w2, b2, *, matmul_dtype=None):
    """One-time parameter prep, hoisted out of the per-call forward path.

    - Biases become (1, D) rows so they broadcast inside the kernel with no
      per-call reshape HLO.
    - Optionally cast weights to bf16 (`matmul_dtype=jnp.bfloat16`) for the
      v6e/v7x MXU when the model is scaled up; a no-op win at this size, so the
      default keeps f32.
    Call this once at init time and reuse the result for every forward call.
    """
    if matmul_dtype is not None:
        w1 = w1.astype(matmul_dtype)
        w2 = w2.astype(matmul_dtype)
    return (w1, b1.reshape(1, -1), w2, b2.reshape(1, -1))


def mlp_forward(x, params, *, tile_b=None, single_buffer_weights=True):
    """y = sigmoid(x @ w1 + b1) @ w2 + b2 in one fused Pallas kernel.

    `params` must come from prepare_params() (cached, not rebuilt per call).
    """
    w1, b1, w2, b2 = params
    B, D_in = x.shape
    D_hid = w1.shape[1]
    D_out = w2.shape[1]

    if tile_b is None:
        # Keep grid=(1,) for small batches (per-step overhead would dominate);
        # split large batches in two "parallel" tiles so v7x's 2 TCs both work.
        if B >= 256 and B % 16 == 0:
            tile_b = B // 2
        else:
            tile_b = B
    assert B % tile_b == 0, "batch must divide evenly into batch tiles"
    # Full-array blocks are exempt from the sublane rule; partial tiles must be
    # a multiple of 8 sublanes for f32 (16 if activations move to bf16).
    assert tile_b == B or tile_b % 8 == 0, \
        "partial batch tiles must be a multiple of 8 sublanes (f32)"

    grid = (B // tile_b,)

    def invariant_spec(shape):
        # Grid-invariant operand (same block every step): single-buffer it so
        # resident weights don't occupy 2x their size in VMEM once tiled/scaled.
        idx = lambda i: (0,) * len(shape)
        if single_buffer_weights:
            return pl.BlockSpec(shape, idx, pipeline_mode=pl.Buffered(1))
        return pl.BlockSpec(shape, idx)

    # Scale-up path (not needed at this size): add a D_hid reduction grid axis
    # marked "arbitrary" (last in grid), tile W1/W2 along it (~512-1024 hidden
    # per step) with a VMEM f32 accumulator, and set
    # pltpu.CompilerParams(vmem_limit_bytes=...) so tiles sized for v5e/v6e's
    # 128 MiB VMEM don't overflow v7x's 64 MiB.
    return pl.pallas_call(
        mlp_kernel,
        out_shape=jax.ShapeDtypeStruct((B, D_out), x.dtype),
        grid_spec=pl.GridSpec(
            grid=grid,
            in_specs=[
                pl.BlockSpec((tile_b, D_in), lambda i: (i, 0)),  # x tile
                invariant_spec((D_in, D_hid)),                   # W1 (resident)
                invariant_spec((1, D_hid)),                      # b1
                invariant_spec((D_hid, D_out)),                  # W2 (resident)
                invariant_spec((1, D_out)),                      # b2
            ],
            out_specs=pl.BlockSpec((tile_b, D_out), lambda i: (i, 0)),
        ),
        compiler_params=pltpu.CompilerParams(
            # Batch axis is independent -> shards across TensorCores (v7x)
            # whenever more than one batch tile is used.
            dimension_semantics=("parallel",),
        ),
    )(x, w1, b1, w2, b2)


if __name__ == "__main__":
    # Shapes implied by the module: (number_input, number_hidden, number_output)
    number_input, number_hidden, number_output = 32, 64, 16
    batch = 8

    key = jax.random.PRNGKey(0)
    kx, kw1, kb1, kw2, kb2 = jax.random.split(key, 5)

    x = jax.random.normal(kx, (batch, number_input), dtype=jnp.float32)

    # Deterministic parameter init (PyTorch-style uniform bounds)
    bound1 = 1.0 / jnp.sqrt(number_input)
    w1 = jax.random.uniform(kw1, (number_input, number_hidden),
                            minval=-bound1, maxval=bound1, dtype=jnp.float32)
    b1 = jax.random.uniform(kb1, (number_hidden,),
                            minval=-bound1, maxval=bound1, dtype=jnp.float32)

    bound2 = 1.0 / jnp.sqrt(number_hidden)
    w2 = jax.random.uniform(kw2, (number_hidden, number_output),
                            minval=-bound2, maxval=bound2, dtype=jnp.float32)
    b2 = jax.random.uniform(kb2, (number_output,),
                            minval=-bound2, maxval=bound2, dtype=jnp.float32)

    # One-time parameter prep (hoisted out of the per-call path).
    params = prepare_params(w1, b1, w2, b2)

    try:
        fwd = jax.jit(mlp_forward)
        y = jax.block_until_ready(fwd(x, params))
    except Exception:
        # pl.Buffered(1) is a perf-only hint; if this Mosaic build rejects
        # single-buffering, fall back to default double-buffered weights.
        fwd = jax.jit(lambda xx, pp: mlp_forward(xx, pp,
                                                 single_buffer_weights=False))
        y = jax.block_until_ready(fwd(x, params))

    # Reference check in plain JAX
    ref = jax.nn.sigmoid(x @ w1 + b1) @ w2 + b2
    assert y.shape == ref.shape, "shape mismatch vs reference"
    assert jnp.allclose(y, ref, atol=1e-5, rtol=1e-5), "mismatch vs reference"

    print("KERNEL_OK")
</pallas_src>

<mosaic_0001>
module attributes {stable_mosaic.version = 11 : i64} {
  func.func @mlp_kernel(%arg0: i32, %arg1: memref<8x32xf32, #tpu.memory_space<vmem>>, %arg2: memref<32x64xf32, #tpu.memory_space<vmem>>, %arg3: memref<1x64xf32, #tpu.memory_space<vmem>>, %arg4: memref<64x16xf32, #tpu.memory_space<vmem>>, %arg5: memref<1x16xf32, #tpu.memory_space<vmem>>, %arg6: memref<8x16xf32, #tpu.memory_space<vmem>>) attributes {dimension_semantics = [#tpu.dimension_semantics<parallel>], iteration_bounds = array<i64: 1>, scalar_prefetch = 0 : i64, scratch_operands = 0 : i64, tpu.core_type = #tpu.core_type<tc>, window_params = [{transform_indices = @transform_0, window_bounds = array<i64: 8, 32>}, {pipeline_mode = #tpu.pipeline_mode<synchronous>, transform_indices = @transform_1, window_bounds = array<i64: 32, 64>}, {pipeline_mode = #tpu.pipeline_mode<synchronous>, transform_indices = @transform_2, window_bounds = array<i64: 1, 64>}, {pipeline_mode = #tpu.pipeline_mode<synchronous>, transform_indices = @transform_3, window_bounds = array<i64: 64, 16>}, {pipeline_mode = #tpu.pipeline_mode<synchronous>, transform_indices = @transform_4, window_bounds = array<i64: 1, 16>}, {transform_indices = @transform_5, window_bounds = array<i64: 8, 16>}]} {
    %c0 = arith.constant 0 : index
    %c0_0 = arith.constant 0 : index
    %0 = vector.load %arg1[%c0, %c0_0] : memref<8x32xf32, #tpu.memory_space<vmem>>, vector<8x32xf32>
    %c0_1 = arith.constant 0 : index
    %c0_2 = arith.constant 0 : index
    %1 = vector.load %arg2[%c0_1, %c0_2] : memref<32x64xf32, #tpu.memory_space<vmem>>, vector<32x64xf32>
    %cst = arith.constant dense<0.000000e+00> : vector<8x64xf32>
    %2 = tpu.matmul %0, %1, %cst {dimension_numbers = #tpu.dot_dimension_numbers<[1], [0], [0], [1], [0, 0, 1, 1], [], []>} : vector<8x32xf32>, vector<32x64xf32>, vector<8x64xf32> -> vector<8x64xf32>
    %c0_3 = arith.constant 0 : index
    %c0_4 = arith.constant 0 : index
    %3 = vector.load %arg3[%c0_3, %c0_4] : memref<1x64xf32, #tpu.memory_space<vmem>>, vector<1x64xf32>
    %4 = vector.broadcast %3 : vector<1x64xf32> to vector<8x64xf32>
    %5 = arith.addf %2, %4 : vector<8x64xf32>
    %6 = arith.negf %5 : vector<8x64xf32>
    %7 = math.exp %6 : vector<8x64xf32>
    %cst_5 = arith.constant 1.000000e+00 : f32
    %8 = vector.broadcast %cst_5 : f32 to vector<8x64xf32>
    %9 = arith.addf %8, %7 : vector<8x64xf32>
    %10 = arith.divf %8, %9 : vector<8x64xf32>
    %c0_6 = arith.constant 0 : index
    %c0_7 = arith.constant 0 : index
    %11 = vector.load %arg4[%c0_6, %c0_7] : memref<64x16xf32, #tpu.memory_space<vmem>>, vector<64x16xf32>
    %cst_8 = arith.constant dense<0.000000e+00> : vector<8x16xf32>
    %12 = tpu.matmul %10, %11, %cst_8 {dimension_numbers = #tpu.dot_dimension_numbers<[1], [0], [0], [1], [0, 0, 1, 1], [], []>} : vector<8x64xf32>, vector<64x16xf32>, vector<8x16xf32> -> vector<8x16xf32>
    %c0_9 = arith.constant 0 : index
    %c0_10 = arith.constant 0 : index
    %13 = vector.load %arg5[%c0_9, %c0_10] : memref<1x16xf32, #tpu.memory_space<vmem>>, vector<1x16xf32>
    %14 = vector.broadcast %13 : vector<1x16xf32> to vector<8x16xf32>
    %15 = arith.addf %12, %14 : vector<8x16xf32>
    %c0_11 = arith.constant 0 : index
    %c0_12 = arith.constant 0 : index
    %16 = vector.load %arg6[%c0_11, %c0_12] : memref<8x16xf32, #tpu.memory_space<vmem>>, vector<8x16xf32>
    tpu.vector_store %arg6[%c0_11, %c0_12], %15 {strides = array<i32>} : memref<8x16xf32, #tpu.memory_space<vmem>>, vector<8x16xf32>,
    return
  }
  func.func @transform_0(%arg0: i32) -> (i32, i32) {
    %c0_i32 = arith.constant 0 : i32
    %c0_i32_0 = arith.constant 0 : i32
    return %arg0, %c0_i32 : i32, i32
  }
  func.func @transform_1(%arg0: i32) -> (i32, i32) {
    %c0_i32 = arith.constant 0 : i32
    %c0_i32_0 = arith.constant 0 : i32
    %c0_i32_1 = arith.constant 0 : i32
    return %c0_i32, %c0_i32_0 : i32, i32
  }
  func.func @transform_2(%arg0: i32) -> (i32, i32) {
    %c0_i32 = arith.constant 0 : i32
    %c0_i32_0 = arith.constant 0 : i32
    %c0_i32_1 = arith.constant 0 : i32
    return %c0_i32, %c0_i32_0 : i32, i32
  }
  func.func @transform_3(%arg0: i32) -> (i32, i32) {
    %c0_i32 = arith.constant 0 : i32
    %c0_i32_0 = arith.constant 0 : i32
    %c0_i32_1 = arith.constant 0 : i32
    return %c0_i32, %c0_i32_0 : i32, i32
  }
  func.func @transform_4(%arg0: i32) -> (i32, i32) {
    %c0_i32 = arith.constant 0 : i32
    %c0_i32_0 = arith.constant 0 : i32
    %c0_i32_1 = arith.constant 0 : i32
    return %c0_i32, %c0_i32_0 : i32, i32
  }
  func.func @transform_5(%arg0: i32) -> (i32, i32) {
    %c0_i32 = arith.constant 0 : i32
    %c0_i32_0 = arith.constant 0 : i32
    return %arg0, %c0_i32 : i32, i32
  }
}

module attributes {stable_mosaic.version = 11 : i64} {
  func.func @mlp_kernel(%arg0: i32, %arg1: memref<8x32xf32, #tpu.memory_space<vmem>>, %arg2: memref<32x64xf32, #tpu.memory_space<vmem>>, %arg3: memref<1x64xf32, #tpu.memory_space<vmem>>, %arg4: memref<64x16xf32, #tpu.memory_space<vmem>>, %arg5: memref<1x16xf32, #tpu.memory_space<vmem>>, %arg6: memref<8x16xf32, #tpu.memory_space<vmem>>) attributes {dimension_semantics = [#tpu.dimension_semantics<parallel>], iteration_bounds = array<i64: 1>, scalar_prefetch = 0 : i64, scratch_operands = 0 : i64, tpu.core_type = #tpu.core_type<tc>, window_params = [{transform_indices = @transform_0, window_bounds = array<i64: 8, 32>}, {pipeline_mode = #tpu.pipeline_mode<synchronous>, transform_indices = @transform_1, window_bounds = array<i64: 32, 64>}, {pipeline_mode = #tpu.pipeline_mode<synchronous>, transform_indices = @transform_2, window_bounds = array<i64: 1, 64>}, {pipeline_mode = #tpu.pipeline_mode<synchronous>, transform_indices = @transform_3, window_bounds = array<i64: 64, 16>}, {pipeline_mode = #tpu.pipeline_mode<synchronous>, transform_indices = @transform_4, window_bounds = array<i64: 1, 16>}, {transform_indices = @transform_5, window_bounds = array<i64: 8, 16>}]} {
    %c0 = arith.constant 0 : index
    %c0_0 = arith.constant 0 : index
    %0 = vector.load %arg1[%c0, %c0_0] : memref<8x32xf32, #tpu.memory_space<vmem>>, vector<8x32xf32>
    %c0_1 = arith.constant 0 : index
    %c0_2 = arith.constant 0 : index
    %1 = vector.load %arg2[%c0_1, %c0_2] : memref<32x64xf32, #tpu.memory_space<vmem>>, vector<32x64xf32>
    %cst = arith.constant dense<0.000000e+00> : vector<8x64xf32>
    %2 = tpu.matmul %0, %1, %cst {dimension_numbers = #tpu.dot_dimension_numbers<[1], [0], [0], [1], [0, 0, 1, 1], [], []>} : vector<8x32xf32>, vector<32x64xf32>, vector<8x64xf32> -> vector<8x64xf32>
    %c0_3 = arith.constant 0 : index
    %c0_4 = arith.constant 0 : index
    %3 = vector.load %arg3[%c0_3, %c0_4] : memref<1x64xf32, #tpu.memory_space<vmem>>, vector<1x64xf32>
    %4 = vector.broadcast %3 : vector<1x64xf32> to vector<8x64xf32>
    %5 = arith.addf %2, %4 : vector<8x64xf32>
    %6 = arith.negf %5 : vector<8x64xf32>
    %7 = math.exp %6 : vector<8x64xf32>
    %cst_5 = arith.constant 1.000000e+00 : f32
    %8 = vector.broadcast %cst_5 : f32 to vector<8x64xf32>
    %9 = arith.addf %8, %7 : vector<8x64xf32>
    %10 = arith.divf %8, %9 : vector<8x64xf32>
    %c0_6 = arith.constant 0 : index
    %c0_7 = arith.constant 0 : index
    %11 = vector.load %arg4[%c0_6, %c0_7] : memref<64x16xf32, #tpu.memory_space<vmem>>, vector<64x16xf32>
    %cst_8 = arith.constant dense<0.000000e+00> : vector<8x16xf32>
    %12 = tpu.matmul %10, %11, %cst_8 {dimension_numbers = #tpu.dot_dimension_numbers<[1], [0], [0], [1], [0, 0, 1, 1], [], []>} : vector<8x64xf32>, vector<64x16xf32>, vector<8x16xf32> -> vector<8x16xf32>
    %c0_9 = arith.constant 0 : index
    %c0_10 = arith.constant 0 : index
    %13 = vector.load %arg5[%c0_9, %c0_10] : memref<1x16xf32, #tpu.memory_space<vmem>>, vector<1x16xf32>
    %14 = vector.broadcast %13 : vector<1x16xf32> to vector<8x16xf32>
    %15 = arith.addf %12, %14 : vector<8x16xf32>
    %c0_11 = arith.constant 0 : index
    %c0_12 = arith.constant 0 : index
    %16 = vector.load %arg6[%c0_11, %c0_12] : memref<8x16xf32, #tpu.memory_space<vmem>>, vector<8x16xf32>
    tpu.vector_store %arg6[%c0_11, %c0_12], %15 {strides = array<i32>} : memref<8x16xf32, #tpu.memory_space<vmem>>, vector<8x16xf32>,
    return
  }
  func.func @transform_0(%arg0: i32) -> (i32, i32) {
    %c0_i32 = arith.constant 0 : i32
    %c0_i32_0 = arith.constant 0 : i32
    return %arg0, %c0_i32 : i32, i32
  }
  func.func @transform_1(%arg0: i32) -> (i32, i32) {
    %c0_i32 = arith.constant 0 : i32
    %c0_i32_0 = arith.constant 0 : i32
    %c0_i32_1 = arith.constant 0 : i32
    return %c0_i32, %c0_i32_0 : i32, i32
  }
  func.func @transform_2(%arg0: i32) -> (i32, i32) {
    %c0_i32 = arith.constant 0 : i32
    %c0_i32_0 = arith.constant 0 : i32
    %c0_i32_1 = arith.constant 0 : i32
    return %c0_i32, %c0_i32_0 : i32, i32
  }
  func.func @transform_3(%arg0: i32) -> (i32, i32) {
    %c0_i32 = arith.constant 0 : i32
    %c0_i32_0 = arith.constant 0 : i32
    %c0_i32_1 = arith.constant 0 : i32
    return %c0_i32, %c0_i32_0 : i32, i32
  }
  func.func @transform_4(%arg0: i32) -> (i32, i32) {
    %c0_i32 = arith.constant 0 : i32
    %c0_i32_0 = arith.constant 0 : i32
    %c0_i32_1 = arith.constant 0 : i32
    return %c0_i32, %c0_i32_0 : i32, i32
  }
  func.func @transform_5(%arg0: i32) -> (i32, i32) {
    %c0_i32 = arith.constant 0 : i32
    %c0_i32_0 = arith.constant 0 : i32
    return %arg0, %c0_i32 : i32, i32
  }
}

</mosaic_0001>

<bundles_post_ra>
// kernel: mlp_forward.1
= control target key start
LH: loop header
LB: loop body
LE: loop exit
PB: predicated region body
PF: predicated region fallthrough
CT: control target
= control target key end

     0   :  { %v296_v1 = vmov 0.0   ;;  %vm297_vm0 = vmmov 0   ;;  %s377_s0 = inlined_call_operand.vmem [shape: f32[8,32], index: 0, kind: input, shape index: {}]   ;;  %s378_s1 = inlined_call_operand.vmem [shape: f32[32,64], index: 1, kind: input, shape index: {}]   ;;  %s379_s2 = inlined_call_operand.vmem [shape: f32[1,64], index: 2, kind: input, shape index: {}]   ;;  %s380_s3 = inlined_call_operand.vmem [shape: f32[64,16], index: 3, kind: input, shape index: {}]   ;;  %s381_s4 = inlined_call_operand.vmem [shape: f32[1,16], index: 4, kind: input, shape index: {}]   ;;  %s382_s5 = inlined_call_operand.hbm [shape: f32[8,16], index: 5, kind: output, shape index: {}]  }
   0x1   :  { %v25_v0 = vld [vmem:[%s378_s1 + $0x18] sm:$0xff]  ;;  %237 = vmatprep.subr.mxu0 %v296_v1  ;;  %v24_v2 = vld [vmem:[%s378_s1 + $0x10] sm:$0xff]  ;;  %245 = vmatprep.mubr.msk.f32.mxu0 %vm297_vm0, %v296_v1 }
   0x2   :  { %238 = vmatpush3.msra.mxu0 %v25_v0  ;;  %248 = vmatprep.subr.mxu1 %v296_v1 }
   0x3   :  { %10 = vsyncpa [#allocation3], 0  ;;  %239 = vmatprep.subr.mxu0 %v296_v1  ;;  %v23_v3 = vld [vmem:[%s378_s1 + $0x8] sm:$0xff]  ;;  %264 = vmatprep.mubr.msk.f32.mxu1 %vm297_vm0, %v296_v1  ;;  %v22_v4 = vld [vmem:[%s378_s1] sm:$0xff]  ;;  %vm33_vm1 = vcmask 261120   ;;  %vm128_vm2 = vcmask 523264  }
   0x4   :  { %240 = vmatpush3.msra.mxu0 %v24_v2  ;;  %v21_v5 = vld [vmem:[%s377_s0] sm:$0xff]  ;;  %v120_v6 = vld [vmem:[%s380_s3 + $0x38] sm:$0xff]  ;;  %v119_v7 = vld [vmem:[%s380_s3 + $0x30] sm:$0xff]  ;;  %s298_s20 = smov [#allocation2]   ;;  %vm202_vm3 = vcmask 130048  }
   0x5   :  { %241 = vmatprep.subr.mxu0 %v296_v1  ;;  %249 = vmatpush3.msra.mxu1 %v120_v6  ;;  %v118_v8 = vld [vmem:[%s380_s3 + $0x28] sm:$0xff]  ;;  %v117_v9 = vld [vmem:[%s380_s3 + $0x20] sm:$0xff]  ;;  %v116_v10 = vld [vmem:[%s380_s3 + $0x18] sm:$0xff]  ;;  %s210_s21 = sshll.u32 %s298_s20, 4  ;;  %s211_s21 = int_to_ptr.vmem [resolvable:$true] %s210_s21 }
   0x6   :  { %242 = vmatpush3.msra.mxu0 %v23_v3  ;;  %250 = vmatprep.subr.mxu1 %v296_v1  ;;  %v115_v11 = vld [vmem:[%s380_s3 + $0x10] sm:$0xff]  ;;  %v114_v12 = vld [vmem:[%s380_s3 + $0x8] sm:$0xff]  ;;  %v113_v13 = vld [vmem:[%s380_s3] sm:$0xff]  ;;  %p279_p1 = scmp.lt.s32.totalorder %s211_s21, %s211_s21 }
   0x7   :  { %243 = vmatprep.subr.mxu0 %v296_v1  ;;  %251 = vmatpush3.msra.mxu1 %v119_v7  ;;  %v218_v14 = vld [vmem:[%s379_s2] ss:$0 sm:$0xff]  ;;  %s274_s2 = scalar_lea.vmem %s211_s21, 128 }
   0x8   :  { %244 = vmatpush3.msra.mxu0 %v22_v4  ;;  %252 = vmatprep.subr.mxu1 %v296_v1  ;;  %v221_v22 = vld [vmem:[%s381_s4] ss:$0 sm:$0xff]  ;;  %p275_p0 = scmp.ne.s32.totalorder %s211_s21, %s274_s2  ;;  %p280_p2 = scmp.lt.s32.totalorder %s274_s2, %s274_s2 }
   0x9   :  { %246 = vmatmul.mubr.msk.f32.vlgmr.msra.gmra.mxu0 %vm33_vm1, %v21_v5  ;;  %253 = vmatpush3.msra.mxu1 %v118_v8 }
   0xa   :  { %254 = vmatprep.subr.mxu1 %v296_v1  ;;  %p281_p3 = por %p280_p2, %p279_p1 }
   0xb   :  { %255 = vmatpush3.msra.mxu1 %v117_v9 }
   0xc   :  { %256 = vmatprep.subr.mxu1 %v296_v1  ;;  %p282_p4 = pnand %p281_p3, %p275_p0 }
   0xd   :  { %257 = vmatpush3.msra.mxu1 %v116_v10 }
   0xe   :  { %258 = vmatprep.subr.mxu1 %v296_v1 }
   0xf   :  { %259 = vmatpush3.msra.mxu1 %v115_v11 }
  0x10   :  { %260 = vmatprep.subr.mxu1 %v296_v1 }
  0x11   :  { %261 = vmatpush3.msra.mxu1 %v114_v12 }
  0x12   :  { %262 = vmatprep.subr.mxu1 %v296_v1 }
  0x13   :  { %263 = vmatpush3.msra.mxu1 %v113_v13 }
  0xc9   :  { %v103_v15 = vpop.f32.mrf.mxu0 }
  0xca   :  { %v104_v16 = vadd.f32 %v218_v14, %v103_v15 }
  0xcb   :  { %v247_v17 = vpop.f32.mrf.mxu0 }
  0xcc   :  { %v220_v18 = vmul.f32 -1.442695, %v104_v16 }
  0xce   :  { %270 = vpow2.f32 %v220_v18 }
  0xdb   :  { %v271_v19 = vpop.eup %270 }
  0xdc   :  { %v110_v20 = vadd.f32 1.0, %v271_v19 }
  0xde   :  { %272 = vrcp.f32 %v110_v20 }
  0xeb   :  { %v273_v21 = vpop.eup %272 }
  0xec   :  { %265 = vmatmul.mubr.msk.f32.vlgmr.msra.gmra.mxu1 %vm128_vm2, %v273_v21 }
 0x1ac   :  { %v198_v23 = vpop.f32.mrf.mxu1 }
 0x1ad   :  { %v199_v24 = vadd.f32 %v221_v22, %v198_v23 }
 0x1ae   :  { %v266_v25 = vpop.f32.mrf.mxu1 }
 0x1af   :  { %203 = vst.msk [vmem:[#allocation2] sm:$0xff] %vm202_vm3, %v199_v24 }
 0x1b0   :  { %285 = shalt.err (!%p282_p4)
}
 0x1b1   :  { %213 = dma.vmem_to_hbm [thread:$0]  %s211_s21, 128, %s382_s5, [#allocation3]  }
 0x1b2   :  { %294 = dma.done.wait [#allocation3], 128  }
 0x1b3   :  { %295 = vsyncadd [#allocation3], 4294967168 }
 0x1b4   :  { %217 = vsyncpa [#allocation3], 1 }

// kernel: _lambda_.1
= control target key start
LH: loop header
LB: loop body
LE: loop exit
PB: predicated region body
PF: predicated region fallthrough
CT: control target
= control target key end

     0   :  { %v296_v1 = vmov 0.0   ;;  %vm297_vm0 = vmmov 0   ;;  %s377_s0 = inlined_call_operand.vmem [shape: f32[8,32], index: 0, kind: input, shape index: {}]   ;;  %s378_s1 = inlined_call_operand.vmem [shape: f32[32,64], index: 1, kind: input, shape index: {}]   ;;  %s379_s2 = inlined_call_operand.vmem [shape: f32[1,64], index: 2, kind: input, shape index: {}]   ;;  %s380_s3 = inlined_call_operand.vmem [shape: f32[64,16], index: 3, kind: input, shape index: {}]   ;;  %s381_s4 = inlined_call_operand.vmem [shape: f32[1,16], index: 4, kind: input, shape index: {}]   ;;  %s382_s5 = inlined_call_operand.hbm [shape: f32[8,16], index: 5, kind: output, shape index: {}]  }
   0x1   :  { %v25_v0 = vld [vmem:[%s378_s1 + $0x18] sm:$0xff]  ;;  %237 = vmatprep.subr.mxu0 %v296_v1  ;;  %v24_v2 = vld [vmem:[%s378_s1 + $0x10] sm:$0xff]  ;;  %245 = vmatprep.mubr.msk.f32.mxu0 %vm297_vm0, %v296_v1 }
   0x2   :  { %238 = vmatpush3.msra.mxu0 %v25_v0  ;;  %248 = vmatprep.subr.mxu1 %v296_v1 }
   0x3   :  { %10 = vsyncpa [#allocation3], 0  ;;  %239 = vmatprep.subr.mxu0 %v296_v1  ;;  %v23_v3 = vld [vmem:[%s378_s1 + $0x8] sm:$0xff]  ;;  %264 = vmatprep.mubr.msk.f32.mxu1 %vm297_vm0, %v296_v1  ;;  %v22_v4 = vld [vmem:[%s378_s1] sm:$0xff]  ;;  %vm33_vm1 = vcmask 261120   ;;  %vm128_vm2 = vcmask 523264  }
   0x4   :  { %240 = vmatpush3.msra.mxu0 %v24_v2  ;;  %v21_v5 = vld [vmem:[%s377_s0] sm:$0xff]  ;;  %v120_v6 = vld [vmem:[%s380_s3 + $0x38] sm:$0xff]  ;;  %v119_v7 = vld [vmem:[%s380_s3 + $0x30] sm:$0xff]  ;;  %s298_s20 = smov [#allocation2]   ;;  %vm202_vm3 = vcmask 130048  }
   0x5   :  { %241 = vmatprep.subr.mxu0 %v296_v1  ;;  %249 = vmatpush3.msra.mxu1 %v120_v6  ;;  %v118_v8 = vld [vmem:[%s380_s3 + $0x28] sm:$0xff]  ;;  %v117_v9 = vld [vmem:[%s380_s3 + $0x20] sm:$0xff]  ;;  %v116_v10 = vld [vmem:[%s380_s3 + $0x18] sm:$0xff]  ;;  %s210_s21 = sshll.u32 %s298_s20, 4  ;;  %s211_s21 = int_to_ptr.vmem [resolvable:$true] %s210_s21 }
   0x6   :  { %242 = vmatpush3.msra.mxu0 %v23_v3  ;;  %250 = vmatprep.subr.mxu1 %v296_v1  ;;  %v115_v11 = vld [vmem:[%s380_s3 + $0x10] sm:$0xff]  ;;  %v114_v12 = vld [vmem:[%s380_s3 + $0x8] sm:$0xff]  ;;  %v113_v13 = vld [vmem:[%s380_s3] sm:$0xff]  ;;  %p279_p1 = scmp.lt.s32.totalorder %s211_s21, %s211_s21 }
   0x7   :  { %243 = vmatprep.subr.mxu0 %v296_v1  ;;  %251 = vmatpush3.msra.mxu1 %v119_v7  ;;  %v218_v14 = vld [vmem:[%s379_s2] ss:$0 sm:$0xff]  ;;  %s274_s2 = scalar_lea.vmem %s211_s21, 128 }
   0x8   :  { %244 = vmatpush3.msra.mxu0 %v22_v4  ;;  %252 = vmatprep.subr.mxu1 %v296_v1  ;;  %v221_v22 = vld [vmem:[%s381_s4] ss:$0 sm:$0xff]  ;;  %p275_p0 = scmp.ne.s32.totalorder %s211_s21, %s274_s2  ;;  %p280_p2 = scmp.lt.s32.totalorder %s274_s2, %s274_s2 }
   0x9   :  { %246 = vmatmul.mubr.msk.f32.vlgmr.msra.gmra.mxu0 %vm33_vm1, %v21_v5  ;;  %253 = vmatpush3.msra.mxu1 %v118_v8 }
   0xa   :  { %254 = vmatprep.subr.mxu1 %v296_v1  ;;  %p281_p3 = por %p280_p2, %p279_p1 }
   0xb   :  { %255 = vmatpush3.msra.mxu1 %v117_v9 }
   0xc   :  { %256 = vmatprep.subr.mxu1 %v296_v1  ;;  %p282_p4 = pnand %p281_p3, %p275_p0 }
   0xd   :  { %257 = vmatpush3.msra.mxu1 %v116_v10 }
   0xe   :  { %258 = vmatprep.subr.mxu1 %v296_v1 }
   0xf   :  { %259 = vmatpush3.msra.mxu1 %v115_v11 }
  0x10   :  { %260 = vmatprep.subr.mxu1 %v296_v1 }
  0x11   :  { %261 = vmatpush3.msra.mxu1 %v114_v12 }
  0x12   :  { %262 = vmatprep.subr.mxu1 %v296_v1 }
  0x13   :  { %263 = vmatpush3.msra.mxu1 %v113_v13 }
  0xc9   :  { %v103_v15 = vpop.f32.mrf.mxu0 }
  0xca   :  { %v104_v16 = vadd.f32 %v218_v14, %v103_v15 }
  0xcb   :  { %v247_v17 = vpop.f32.mrf.mxu0 }
  0xcc   :  { %v220_v18 = vmul.f32 -1.442695, %v104_v16 }
  0xce   :  { %270 = vpow2.f32 %v220_v18 }
  0xdb   :  { %v271_v19 = vpop.eup %270 }
  0xdc   :  { %v110_v20 = vadd.f32 1.0, %v271_v19 }
  0xde   :  { %272 = vrcp.f32 %v110_v20 }
  0xeb   :  { %v273_v21 = vpop.eup %272 }
  0xec   :  { %265 = vmatmul.mubr.msk.f32.vlgmr.msra.gmra.mxu1 %vm128_vm2, %v273_v21 }
 0x1ac   :  { %v198_v23 = vpop.f32.mrf.mxu1 }
 0x1ad   :  { %v199_v24 = vadd.f32 %v221_v22, %v198_v23 }
 0x1ae   :  { %v266_v25 = vpop.f32.mrf.mxu1 }
 0x1af   :  { %203 = vst.msk [vmem:[#allocation2] sm:$0xff] %vm202_vm3, %v199_v24 }
 0x1b0   :  { %285 = shalt.err (!%p282_p4)
}
 0x1b1   :  { %213 = dma.vmem_to_hbm [thread:$0]  %s211_s21, 128, %s382_s5, [#allocation3]  }
 0x1b2   :  { %294 = dma.done.wait [#allocation3], 128  }
 0x1b3   :  { %295 = vsyncadd [#allocation3], 4294967168 }
 0x1b4   :  { %217 = vsyncpa [#allocation3], 1 }

</bundles_post_ra>
